<compile_context>
chip_gen: v7x
topology: tpu7x:2x2x1
jax: 0.10.0
libtpu: 0.0.40
codegen_flags: <defaults>
</compile_context>

<pallas_src>
import functools

import jax
import jax.numpy as jnp
from jax.experimental import pallas as pl
from jax.experimental.pallas import tpu as pltpu


def _round_up(x, m):
    return (x + m - 1) // m * m


def _pick_tile(n_pad, cap):
    """Largest multiple of 128 that divides n_pad and is <= cap."""
    best = 128
    for t in range(128, min(cap, n_pad) + 1, 128):
        if n_pad % t == 0:
            best = t
    return best


# ---------------------------------------------------------------------------
# Kernel 1: GCN layer 1 over the int8 (A + I) stream.
#   acc[i]   = sum_k A_i8[i,k] @ Z1[k]        (Z1 = D^-1/2 X W1, bf16, VMEM-resident)
#   H1[i]    = relu(d_i * acc[i] + b1)
#   out[i]   = d_i * H1[i]                     (= Z2, layer-2 column scale pre-folded)
# grid = (row tiles, contraction tiles); row axis is megacore-"parallel".
# ---------------------------------------------------------------------------
def _gcn_layer1_kernel(dinv_ref, adj_ref, z1_ref, b1_ref, z2_ref, acc_ref, *, tile_k):
    k = pl.program_id(1)

    @pl.when(k == 0)
    def _():
        acc_ref[...] = jnp.zeros_like(acc_ref)

    a = adj_ref[...].astype(jnp.bfloat16)              # int8 -> bf16 on the VPU
    start = pl.multiple_of(k * tile_k, tile_k)
    z = z1_ref[pl.ds(start, tile_k), :]                # resident operand, sliced per k
    acc_ref[...] += jnp.dot(a, z, preferred_element_type=jnp.float32)

    @pl.when(k == pl.num_programs(1) - 1)
    def _():
        d = dinv_ref[...]                              # (tile_r, 1) f32 row D^-1/2
        h1 = jnp.maximum(acc_ref[...] * d + b1_ref[...], 0.0)
        z2_ref[...] = (h1 * d).astype(z2_ref.dtype)    # emit D^-1/2 * H1 for layer 2


# ---------------------------------------------------------------------------
# Kernel 2: GCN layer 2 + per-row-tile mean-pool partials.
#   acc[i]       = sum_k A_i8[i,k] @ Z2[k]            (Z2 = D^-1/2 H1, resident)
#   H2[i]        = (d_i * acc[i])_bf16 @ W2 + b2      (stays in VMEM)
#   partial[i]   = pool[:, i] @ H2[i]                 (written per row tile ->
#                                                      row axis stays "parallel")
# The tiny sum over i and the W3 head run in plain JAX afterwards.
# ---------------------------------------------------------------------------
def _gcn_layer2_pool_kernel(dinv_ref, adj_ref, z2_ref, w2_ref, b2_ref, pool_ref,
                            part_ref, acc_ref, *, tile_k):
    k = pl.program_id(1)

    @pl.when(k == 0)
    def _():
        acc_ref[...] = jnp.zeros_like(acc_ref)

    a = adj_ref[...].astype(jnp.bfloat16)
    start = pl.multiple_of(k * tile_k, tile_k)
    z = z2_ref[pl.ds(start, tile_k), :]
    acc_ref[...] += jnp.dot(a, z, preferred_element_type=jnp.float32)

    @pl.when(k == pl.num_programs(1) - 1)
    def _():
        h2 = jnp.dot((acc_ref[...] * dinv_ref[...]).astype(jnp.bfloat16),
                     w2_ref[...], preferred_element_type=jnp.float32) + b2_ref[...]
        part = jnp.dot(pool_ref[...], h2, preferred_element_type=jnp.float32)
        part_ref[...] = part[None]                     # (1, G, c_hidden)


def graph_gnn_forward(x, edge_index, batch_idx, params, num_graphs, *,
                      tile_r_cap=256, tile_k_cap=1024,
                      vmem_limit_bytes=48 * 1024 * 1024):
    """x: [N, c_in] f32, edge_index: [2, E] int32, batch_idx: [N] int32."""
    n = x.shape[0]
    w1, b1, w2, b2, w3, b3 = params
    c_in, c_hidden = w1.shape
    c_out = w3.shape[1]

    # ---- tiling: pad N only to a multiple of 128; tiles divide n_pad. ----
    n_pad = _round_up(n, 128)
    tile_r = _pick_tile(n_pad, tile_r_cap)
    tile_k = _pick_tile(n_pad, tile_k_cap)
    n_row_tiles = n_pad // tile_r
    n_k_tiles = n_pad // tile_k

    # ---- glue: ONE padded int8 N^2 buffer, A + I with multi-edges counted. ----
    adj = jnp.zeros((n_pad, n_pad), jnp.int8)
    adj = adj.at[edge_index[0], edge_index[1]].add(
        jnp.ones((edge_index.shape[1],), jnp.int8))
    adj = adj.at[jnp.arange(n), jnp.arange(n)].add(jnp.ones((n,), jnp.int8))

    # Degrees of (A + I) straight from the edge list — no extra N^2 pass.
    deg = jnp.zeros((n_pad,), jnp.float32).at[edge_index[0]].add(1.0)
    deg = deg.at[jnp.arange(n)].add(1.0)
    dinv = (1.0 / jnp.sqrt(jnp.maximum(deg, 1.0))).reshape(n_pad, 1)

    # Layer-1 dense operand: W1 folded in, column D^-1/2 pre-applied, bf16.
    z1 = (x.astype(jnp.float32) @ w1) * dinv[:n]
    z1 = jnp.pad(z1, ((0, n_pad - n), (0, 0))).astype(jnp.bfloat16)

    # Mean-pool matrix [G, n_pad] with exact f32 1/count weights (zero on padding,
    # so padded/garbage rows never reach the output).
    onehot = (batch_idx[None, :] == jnp.arange(num_graphs)[:, None]).astype(jnp.float32)
    counts = jnp.maximum(jnp.sum(onehot, axis=1, keepdims=True), 1.0)
    pool = jnp.pad(onehot / counts, ((0, 0), (0, n_pad - n)))

    # ------------- layer 1: Z2 = D^-1/2 relu(Â X W1 + b1) -------------
    cost1 = pl.CostEstimate(
        flops=int(2 * n_pad * n_pad * c_hidden),
        transcendentals=0,
        bytes_accessed=int(n_pad * n_pad + 4 * n_pad * c_hidden + 4 * n_pad),
    )
    z2 = pl.pallas_call(
        functools.partial(_gcn_layer1_kernel, tile_k=tile_k),
        out_shape=jax.ShapeDtypeStruct((n_pad, c_hidden), jnp.bfloat16),
        grid_spec=pltpu.PrefetchScalarGridSpec(
            num_scalar_prefetch=0,
            grid=(n_row_tiles, n_k_tiles),
            in_specs=[
                pl.BlockSpec((tile_r, 1), lambda i, k: (i, 0)),        # D^-1/2 rows
                pl.BlockSpec((tile_r, tile_k), lambda i, k: (i, k)),   # int8 A+I tile
                pl.BlockSpec((n_pad, c_hidden), lambda i, k: (0, 0)),  # Z1 (resident)
                pl.BlockSpec((1, c_hidden), lambda i, k: (0, 0)),      # b1
            ],
            out_specs=pl.BlockSpec((tile_r, c_hidden), lambda i, k: (i, 0)),
            scratch_shapes=[pltpu.VMEM((tile_r, c_hidden), jnp.float32)],
        ),
        compiler_params=pltpu.CompilerParams(
            dimension_semantics=("parallel", "arbitrary"),
            vmem_limit_bytes=vmem_limit_bytes,
        ),
        cost_estimate=cost1,
    )(dinv, adj, z1, b1)

    # ------- layer 2 + per-row-tile mean-pool partials; H2 never hits HBM -------
    cost2 = pl.CostEstimate(
        flops=int(2 * n_pad * n_pad * c_hidden
                  + 2 * n_pad * c_hidden * c_hidden
                  + 2 * num_graphs * n_pad * c_hidden),
        transcendentals=0,
        bytes_accessed=int(n_pad * n_pad + 2 * n_pad * c_hidden
                           + 4 * num_graphs * n_pad
                           + 4 * n_row_tiles * num_graphs * c_hidden),
    )
    partials = pl.pallas_call(
        functools.partial(_gcn_layer2_pool_kernel, tile_k=tile_k),
        out_shape=jax.ShapeDtypeStruct((n_row_tiles, num_graphs, c_hidden),
                                       jnp.float32),
        grid_spec=pltpu.PrefetchScalarGridSpec(
            num_scalar_prefetch=0,
            grid=(n_row_tiles, n_k_tiles),
            in_specs=[
                pl.BlockSpec((tile_r, 1), lambda i, k: (i, 0)),           # D^-1/2 rows
                pl.BlockSpec((tile_r, tile_k), lambda i, k: (i, k)),      # int8 A+I tile
                pl.BlockSpec((n_pad, c_hidden), lambda i, k: (0, 0)),     # Z2 (resident)
                pl.BlockSpec((c_hidden, c_hidden), lambda i, k: (0, 0)),  # W2 (bf16)
                pl.BlockSpec((1, c_hidden), lambda i, k: (0, 0)),         # b2
                pl.BlockSpec((num_graphs, tile_r), lambda i, k: (0, i)),  # pool tile
            ],
            out_specs=pl.BlockSpec((1, num_graphs, c_hidden),
                                   lambda i, k: (i, 0, 0)),
            scratch_shapes=[pltpu.VMEM((tile_r, c_hidden), jnp.float32)],
        ),
        compiler_params=pltpu.CompilerParams(
            dimension_semantics=("parallel", "arbitrary"),
            vmem_limit_bytes=vmem_limit_bytes,
        ),
        cost_estimate=cost2,
    )(dinv, adj, z2, w2.astype(jnp.bfloat16), b2, pool)

    # ---- tiny finalization in plain JAX: sum over row tiles + linear head. ----
    pooled = jnp.sum(partials, axis=0)          # [G, c_hidden] f32
    return pooled @ w3 + b3


def reference_forward(x, edge_index, batch_idx, params, num_graphs):
    """Pure-JAX f32 reference matching the PyTorch module at inference."""
    w1, b1, w2, b2, w3, b3 = params
    n = x.shape[0]
    adj = jnp.zeros((n, n), jnp.float32)
    adj = adj.at[edge_index[0], edge_index[1]].add(1.0)       # multi-edges counted
    adj = adj.at[jnp.arange(n), jnp.arange(n)].add(1.0)       # self-loops
    deg = jnp.sum(adj, axis=1)
    dinv = 1.0 / jnp.sqrt(jnp.maximum(deg, 1.0))
    a_hat = adj * dinv[:, None] * dinv[None, :]
    h = jnp.maximum(a_hat @ (x @ w1) + b1, 0.0)
    h = a_hat @ (h @ w2) + b2
    onehot = (batch_idx[None, :] == jnp.arange(num_graphs)[:, None]).astype(jnp.float32)
    counts = jnp.maximum(jnp.sum(onehot, axis=1, keepdims=True), 1.0)
    pooled = (onehot / counts) @ h
    return pooled @ w3 + b3


def init_params(key, c_in, c_hidden, c_out):
    def glorot(key, shape):
        fan_in, fan_out = shape
        lim = jnp.sqrt(6.0 / (fan_in + fan_out))
        return jax.random.uniform(key, shape, jnp.float32, -lim, lim)

    k1, k2, k3 = jax.random.split(key, 3)
    w1 = glorot(k1, (c_in, c_hidden))
    b1 = jnp.zeros((1, c_hidden), jnp.float32)
    w2 = glorot(k2, (c_hidden, c_hidden))
    b2 = jnp.zeros((1, c_hidden), jnp.float32)
    w3 = glorot(k3, (c_hidden, c_out))
    b3 = jnp.zeros((1, c_out), jnp.float32)
    return (w1, b1, w2, b2, w3, b3)


if __name__ == "__main__":
    key = jax.random.PRNGKey(0)
    c_in, c_hidden, c_out = 4, 32, 3
    kx, kp, ke = jax.random.split(key, 3)
    params = init_params(kp, c_in, c_hidden, c_out)

    # --- Test 1: small batch of 2 graphs, 4 nodes each (8 nodes total). ---
    num_nodes, num_graphs = 8, 2
    x = jax.random.normal(kx, (num_nodes, c_in), jnp.float32)
    src = jnp.array([0, 1, 1, 2, 2, 3, 0, 3, 4, 5, 5, 6, 6, 7, 4, 6], jnp.int32)
    dst = jnp.array([1, 0, 2, 1, 3, 2, 3, 0, 5, 4, 6, 5, 7, 6, 6, 4], jnp.int32)
    edge_index = jnp.stack([src, dst])
    batch_idx = jnp.array([0, 0, 0, 0, 1, 1, 1, 1], jnp.int32)

    out = graph_gnn_forward(x, edge_index, batch_idx, params, num_graphs)
    out = jax.block_until_ready(out)
    ref = reference_forward(x, edge_index, batch_idx, params, num_graphs)
    assert out.shape == (num_graphs, c_out)
    assert bool(jnp.all(jnp.isfinite(out)))
    assert bool(jnp.allclose(out, ref, atol=1e-1, rtol=1e-1))

    # --- Test 2: larger random batch; force a 3x3 grid (multi-k reduction). ---
    n2, g2, e2 = 300, 3, 2000
    x2 = jax.random.normal(kx, (n2, c_in), jnp.float32)
    ks, kd = jax.random.split(ke)
    s2 = jax.random.randint(ks, (e2,), 0, n2, jnp.int32)
    d2 = jax.random.randint(kd, (e2,), 0, n2, jnp.int32)
    edge_index2 = jnp.stack([jnp.concatenate([s2, d2]), jnp.concatenate([d2, s2])])
    batch_idx2 = jnp.repeat(jnp.arange(g2, dtype=jnp.int32), n2 // g2)
    ref2 = reference_forward(x2, edge_index2, batch_idx2, params, g2)

    out2 = graph_gnn_forward(x2, edge_index2, batch_idx2, params, g2,
                             tile_r_cap=128, tile_k_cap=128)
    out2 = jax.block_until_ready(out2)
    assert out2.shape == (g2, c_out)
    assert bool(jnp.all(jnp.isfinite(out2)))
    assert bool(jnp.allclose(out2, ref2, atol=1e-1, rtol=1e-1))

    # --- Test 3: same inputs, default rectangular tiles (wide k tile). ---
    out3 = graph_gnn_forward(x2, edge_index2, batch_idx2, params, g2)
    out3 = jax.block_until_ready(out3)
    assert bool(jnp.allclose(out3, ref2, atol=1e-1, rtol=1e-1))

    print("KERNEL_OK")
</pallas_src>

<mosaic_0001>
module attributes {stable_mosaic.version = 11 : i64} {
  func.func @_gcn_layer1_kernel(%arg0: i32, %arg1: i32, %arg2: memref<128x1xf32, #tpu.memory_space<vmem>>, %arg3: memref<128x128xi8, #tpu.memory_space<vmem>>, %arg4: memref<128x32xbf16, #tpu.memory_space<vmem>>, %arg5: memref<1x32xf32, #tpu.memory_space<vmem>>, %arg6: memref<128x32xbf16, #tpu.memory_space<vmem>>, %arg7: memref<128x32xf32, #tpu.memory_space<vmem>>) attributes {dimension_semantics = [#tpu.dimension_semantics<parallel>, #tpu.dimension_semantics<arbitrary>], iteration_bounds = array<i64: 1, 1>, scalar_prefetch = 0 : i64, scratch_operands = 1 : i64, tpu.core_type = #tpu.core_type<tc>, window_params = [{transform_indices = @transform_0, window_bounds = array<i64: 128, 1>}, {transform_indices = @transform_1, window_bounds = array<i64: 128, 128>}, {pipeline_mode = #tpu.pipeline_mode<synchronous>, transform_indices = @transform_2, window_bounds = array<i64: 128, 32>}, {pipeline_mode = #tpu.pipeline_mode<synchronous>, transform_indices = @transform_3, window_bounds = array<i64: 1, 32>}, {transform_indices = @transform_4, window_bounds = array<i64: 128, 32>}]} {
    %c0_i32 = arith.constant 0 : i32
    %0 = arith.cmpi eq, %arg1, %c0_i32 : i32
    %1 = arith.extui %0 : i1 to i32
    %c0_i32_0 = arith.constant 0 : i32
    %2 = arith.cmpi ne, %1, %c0_i32_0 : i32
    scf.if %2 {
      %cst_9 = arith.constant 0.000000e+00 : f32
      %16 = vector.broadcast %cst_9 : f32 to vector<128x32xf32>
      %c0_10 = arith.constant 0 : index
      %c0_11 = arith.constant 0 : index
      %17 = vector.load %arg7[%c0_10, %c0_11] : memref<128x32xf32, #tpu.memory_space<vmem>>, vector<128x32xf32>
      tpu.vector_store %arg7[%c0_10, %c0_11], %16 {strides = array<i32>} : memref<128x32xf32, #tpu.memory_space<vmem>>, vector<128x32xf32>,
    } else {
    }
    %c0 = arith.constant 0 : index
    %c0_1 = arith.constant 0 : index
    %3 = vector.load %arg3[%c0, %c0_1] : memref<128x128xi8, #tpu.memory_space<vmem>>, vector<128x128xi8>
    %4 = arith.sitofp %3 : vector<128x128xi8> to vector<128x128xbf16>
    %c128_i32 = arith.constant 128 : i32
    %5 = arith.muli %arg1, %c128_i32 : i32
    %6 = tpu.assume_multiple %5, 128 : i32
    %7 = arith.index_cast %6 : i32 to index
    %c0_2 = arith.constant 0 : index
    %8 = vector.load %arg4[%7, %c0_2] : memref<128x32xbf16, #tpu.memory_space<vmem>>, vector<128x32xbf16>
    %c0_3 = arith.constant 0 : index
    %c0_4 = arith.constant 0 : index
    %9 = vector.load %arg7[%c0_3, %c0_4] : memref<128x32xf32, #tpu.memory_space<vmem>>, vector<128x32xf32>
    %cst = arith.constant dense<0.000000e+00> : vector<128x32xf32>
    %10 = tpu.matmul %4, %8, %cst {dimension_numbers = #tpu.dot_dimension_numbers<[1], [0], [0], [1], [0, 0, 1, 1], [], []>} : vector<128x128xbf16>, vector<128x32xbf16>, vector<128x32xf32> -> vector<128x32xf32>
    %11 = arith.addf %9, %10 : vector<128x32xf32>
    %c0_5 = arith.constant 0 : index
    %c0_6 = arith.constant 0 : index
    %12 = vector.load %arg7[%c0_5, %c0_6] : memref<128x32xf32, #tpu.memory_space<vmem>>, vector<128x32xf32>
    tpu.vector_store %arg7[%c0_5, %c0_6], %11 {strides = array<i32>} : memref<128x32xf32, #tpu.memory_space<vmem>>, vector<128x32xf32>,
    %c0_i32_7 = arith.constant 0 : i32
    %13 = arith.cmpi eq, %arg1, %c0_i32_7 : i32
    %14 = arith.extui %13 : i1 to i32
    %c0_i32_8 = arith.constant 0 : i32
    %15 = arith.cmpi ne, %14, %c0_i32_8 : i32
    scf.if %15 {
      %c0_9 = arith.constant 0 : index
      %c0_10 = arith.constant 0 : index
      %16 = vector.load %arg2[%c0_9, %c0_10] : memref<128x1xf32, #tpu.memory_space<vmem>>, vector<128x1xf32>
      %c0_11 = arith.constant 0 : index
      %c0_12 = arith.constant 0 : index
      %17 = vector.load %arg7[%c0_11, %c0_12] : memref<128x32xf32, #tpu.memory_space<vmem>>, vector<128x32xf32>
      %18 = vector.broadcast %16 : vector<128x1xf32> to vector<128x32xf32>
      %19 = arith.mulf %17, %18 : vector<128x32xf32>
      %c0_13 = arith.constant 0 : index
      %c0_14 = arith.constant 0 : index
      %20 = vector.load %arg5[%c0_13, %c0_14] : memref<1x32xf32, #tpu.memory_space<vmem>>, vector<1x32xf32>
      %21 = vector.broadcast %20 : vector<1x32xf32> to vector<128x32xf32>
      %22 = arith.addf %19, %21 : vector<128x32xf32>
      %cst_15 = arith.constant 0.000000e+00 : f32
      %23 = vector.broadcast %cst_15 : f32 to vector<128x32xf32>
      %24 = arith.maximumf %22, %23 : vector<128x32xf32>
      %25 = vector.broadcast %16 : vector<128x1xf32> to vector<128x32xf32>
      %26 = arith.mulf %24, %25 : vector<128x32xf32>
      %27 = arith.truncf %26 : vector<128x32xf32> to vector<128x32xbf16>
      %c0_16 = arith.constant 0 : index
      %c0_17 = arith.constant 0 : index
      %28 = vector.load %arg6[%c0_16, %c0_17] : memref<128x32xbf16, #tpu.memory_space<vmem>>, vector<128x32xbf16>
      tpu.vector_store %arg6[%c0_16, %c0_17], %27 {strides = array<i32>} : memref<128x32xbf16, #tpu.memory_space<vmem>>, vector<128x32xbf16>,
    } else {
    }
    return
  }
  func.func @transform_0(%arg0: i32, %arg1: i32) -> (i32, i32) {
    %c0_i32 = arith.constant 0 : i32
    %c0_i32_0 = arith.constant 0 : i32
    return %arg0, %c0_i32 : i32, i32
  }
  func.func @transform_1(%arg0: i32, %arg1: i32) -> (i32, i32) {
    %c0_i32 = arith.constant 0 : i32
    return %arg0, %arg1 : i32, i32
  }
  func.func @transform_2(%arg0: i32, %arg1: i32) -> (i32, i32) {
    %c0_i32 = arith.constant 0 : i32
    %c0_i32_0 = arith.constant 0 : i32
    %c0_i32_1 = arith.constant 0 : i32
    return %c0_i32, %c0_i32_0 : i32, i32
  }
  func.func @transform_3(%arg0: i32, %arg1: i32) -> (i32, i32) {
    %c0_i32 = arith.constant 0 : i32
    %c0_i32_0 = arith.constant 0 : i32
    %c0_i32_1 = arith.constant 0 : i32
    return %c0_i32, %c0_i32_0 : i32, i32
  }
  func.func @transform_4(%arg0: i32, %arg1: i32) -> (i32, i32) {
    %c0_i32 = arith.constant 0 : i32
    %c0_i32_0 = arith.constant 0 : i32
    return %arg0, %c0_i32 : i32, i32
  }
}

</mosaic_0001>

<bundles_post_ra>
// kernel: tpu_custom_call.1
= control target key start
LH: loop header
LB: loop body
LE: loop exit
PB: predicated region body
PF: predicated region fallthrough
CT: control target
= control target key end

     0   :  { %v656_v1 = vmov 0   ;;  %vm22_vm0 = vcmask 261120   ;;  %v657_v37 = vmov 0.0   ;;  %vm516_vm1 = vcmask 257024   ;;  %s948_s2 = inlined_call_operand.vmem [shape: bf16[128,32], index: 2, kind: input, shape index: {}]   ;;  %s949_s1 = inlined_call_operand.vmem [shape: s8[128,128], index: 1, kind: input, shape index: {}]   ;;  %s950_s0 = inlined_call_operand.vmem [shape: f32[128,1], index: 0, kind: input, shape index: {}]   ;;  %s951_s3 = inlined_call_operand.vmem [shape: f32[1,32], index: 3, kind: input, shape index: {}]   ;;  %s952_s4 = inlined_call_operand.vmem [shape: bf16[128,32], index: 4, kind: output, shape index: {}]  }
   0x1   :  { %v648_v0 = vld [vmem:[%s948_s2] sm:$0xff]   ;;  %647 = vset.pattern.permute.xlu1 %v656_v1  ;;  %646 = vset.pattern.permute.xlu0 %v656_v1  ;;  %v649_v2 = vld [vmem:[%s948_s2 + $0x8] sm:$0xff]   ;;  %v650_v3 = vld [vmem:[%s948_s2 + $0x10] sm:$0xff]   ;;  %25 = vst.msk [vmem:[#allocation2 + $0x10] sm:$0xff] %vm22_vm0, %v657_v37 }
   0x2   :  { %596 = vmatprep.subr.bf16.mxu0 %v648_v0  ;;  %628 = vmatprep.subr.bf16.mxu1 %v648_v0  ;;  %v651_v4 = vld [vmem:[%s948_s2 + $0x18] sm:$0xff]   ;;  %v698_v5 = vld [vmem:[%s949_s1] sm:$0xff]  ;;  %v703_v6 = vld [vmem:[%s949_s1 + $0x10] sm:$0xff]  ;;  %23 = vst.msk [vmem:[#allocation2] sm:$0xff] %vm22_vm0, %v657_v37 }
   0x3   :  { %597 = vmatpush3.bf16.msra.mxu0 %v648_v0  ;;  %636 = vmatpush3.bf16.msra.mxu1 %v648_v0  ;;  %v43_v7 = vunpack.c.l.s8.bf16 %v698_v5  ;;  %v47_v8 = vunpack.c.l.s8.bf16 %v703_v6  ;;  %v271_v9 = vld [vmem:[%s950_s0 + $0x10] sm:$0xff]  ;;  %v269_v10 = vld [vmem:[%s950_s0] sm:$0xff]  ;;  %v272_v11 = vld [vmem:[%s950_s0 + $0x18] sm:$0xff]  ;;  %v44_v27 = vunpack.c.h.s8.bf16 %v698_v5  ;;  %v48_v28 = vunpack.c.h.s8.bf16 %v703_v6  ;;  %24 = vst.msk [vmem:[#allocation2 + $0x8] sm:$0xff] %vm22_vm0, %v657_v37 }
   0x4   :  { %598 = vmatprep.subr.bf16.mxu0 %v649_v2  ;;  %629 = vmatprep.subr.bf16.mxu1 %v649_v2  ;;  %v270_v12 = vld [vmem:[%s950_s0 + $0x8] sm:$0xff]  ;;  %v652_v13 = vld [vmem:[%s948_s2 + $0x20] sm:$0xff]   ;;  %v276_v17 = vld [vmem:[%s950_s0 + $0x38] sm:$0xff]  ;;  %26 = vst.msk [vmem:[#allocation2 + $0x18] sm:$0xff] %vm22_vm0, %v657_v37 }
   0x5   :  { %313 = vperm.xlu1 %647, %v271_v9   ;;  %303 = vperm.xlu0 %646, %v269_v10   ;;  %v274_v14 = vld [vmem:[%s950_s0 + $0x28] sm:$0xff]  ;;  %v273_v15 = vld [vmem:[%s950_s0 + $0x20] sm:$0xff]  ;;  %v275_v18 = vld [vmem:[%s950_s0 + $0x30] sm:$0xff]  ;;  %27 = vst.msk [vmem:[#allocation2 + $0x20] sm:$0xff] %vm22_vm0, %v657_v37 }
   0x6   :  { %612 = vmatprep.mubr.bf16.mxu0 %v43_v7  ;;  %620 = vmatprep.mubr.bf16.mxu1 %v47_v8  ;;  %v653_v16 = vld [vmem:[%s948_s2 + $0x28] sm:$0xff]   ;;  %v654_v19 = vld [vmem:[%s948_s2 + $0x30] sm:$0xff]   ;;  %v277_v21 = vld [vmem:[%s950_s0 + $0x40] sm:$0xff]  ;;  %28 = vst.msk [vmem:[#allocation2 + $0x28] sm:$0xff] %vm22_vm0, %v657_v37 }
   0x7   :  { %599 = vmatpush3.bf16.msra.mxu0 %v649_v2  ;;  %637 = vmatpush3.bf16.msra.mxu1 %v649_v2  ;;  %v278_v20 = vld [vmem:[%s950_s0 + $0x48] sm:$0xff]  ;;  %v655_v22 = vld [vmem:[%s948_s2 + $0x38] sm:$0xff]   ;;  %v279_v24 = vld [vmem:[%s950_s0 + $0x50] sm:$0xff]  ;;  %29 = vst.msk [vmem:[#allocation2 + $0x30] sm:$0xff] %vm22_vm0, %v657_v37 }
   0x8   :  { %600 = vmatprep.subr.bf16.mxu0 %v650_v3  ;;  %630 = vmatprep.subr.bf16.mxu1 %v650_v3  ;;  %v280_v23 = vld [vmem:[%s950_s0 + $0x58] sm:$0xff]  ;;  %v40_v25 = vld [vmem:[%s949_s1 + $0x8] sm:$0xff]  ;;  %v281_v32 = vld [vmem:[%s950_s0 + $0x60] sm:$0xff]  ;;  %30 = vst.msk [vmem:[#allocation2 + $0x38] sm:$0xff] %vm22_vm0, %v657_v37 }
   0x9   :  { %318 = vperm.xlu1 %647, %v272_v11   ;;  %308 = vperm.xlu0 %646, %v270_v12   ;;  %v42_v26 = vld [vmem:[%s949_s1 + $0x18] sm:$0xff]  ;;  %v45_v29 = vunpack.c.l.s8.bf16 %v40_v25  ;;  %v282_v31 = vld [vmem:[%s950_s0 + $0x68] sm:$0xff]  ;;  %v283_v34 = vld [vmem:[%s950_s0 + $0x70] sm:$0xff]  ;;  %v46_v35 = vunpack.c.h.s8.bf16 %v40_v25  ;;  %31 = vst.msk [vmem:[#allocation2 + $0x40] sm:$0xff] %vm22_vm0, %v657_v37 }
   0xa   :  { %v49_v30 = vunpack.c.l.s8.bf16 %v42_v26  ;;  %v284_v33 = vld [vmem:[%s950_s0 + $0x78] sm:$0xff]  ;;  %v50_v36 = vunpack.c.h.s8.bf16 %v42_v26  ;;  %32 = vst.msk [vmem:[#allocation2 + $0x48] sm:$0xff] %vm22_vm0, %v657_v37  ;;  %33 = vst.msk [vmem:[#allocation2 + $0x50] sm:$0xff] %vm22_vm0, %v657_v37  ;;  %v74_v46 = vld [vmem:[#allocation2 + $0x10] sm:$0xff] }
   0xb   :  { %601 = vmatpush3.bf16.msra.mxu0 %v650_v3  ;;  %638 = vmatpush3.bf16.msra.mxu1 %v650_v3  ;;  %34 = vst.msk [vmem:[#allocation2 + $0x58] sm:$0xff] %vm22_vm0, %v657_v37  ;;  %35 = vst.msk [vmem:[#allocation2 + $0x60] sm:$0xff] %vm22_vm0, %v657_v37  ;;  %v72_v50 = vld [vmem:[#allocation2] sm:$0xff]  ;;  %v75_v54 = vld [vmem:[#allocation2 + $0x18] sm:$0xff] }
   0xc   :  { %602 = vmatprep.subr.bf16.mxu0 %v651_v4  ;;  %631 = vmatprep.subr.bf16.mxu1 %v651_v4  ;;  %36 = vst.msk [vmem:[#allocation2 + $0x68] sm:$0xff] %vm22_vm0, %v657_v37  ;;  %37 = vst.msk [vmem:[#allocation2 + $0x70] sm:$0xff] %vm22_vm0, %v657_v37  ;;  %v73_v60 = vld [vmem:[#allocation2 + $0x8] sm:$0xff]  ;;  %v76_v12 = vld [vmem:[#allocation2 + $0x20] sm:$0xff] }
   0xd   :  { %328 = vperm.xlu1 %647, %v274_v14   ;;  %323 = vperm.xlu0 %646, %v273_v15   ;;  %38 = vst.msk [vmem:[#allocation2 + $0x78] sm:$0xff] %vm22_vm0, %v657_v37 }
   0xe   :  { %v78_v8 = vld [vmem:[#allocation2 + $0x30] sm:$0xff] }
   0xf   :  { %603 = vmatpush3.bf16.msra.mxu0 %v651_v4  ;;  %639 = vmatpush3.bf16.msra.mxu1 %v651_v4 }
  0x10   :  { %604 = vmatprep.subr.bf16.mxu0 %v652_v13  ;;  %632 = vmatprep.subr.bf16.mxu1 %v652_v13  ;;  %v80_v51 = vld [vmem:[#allocation2 + $0x40] sm:$0xff] }
  0x11   :  { %338 = vperm.xlu1 %647, %v276_v17   ;;  %333 = vperm.xlu0 %646, %v275_v18   ;;  %v82_v47 = vld [vmem:[#allocation2 + $0x50] sm:$0xff]  ;;  %v81_v61 = vld [vmem:[#allocation2 + $0x48] sm:$0xff]  ;;  %v826_v18 = vld [vmem:[%s951_s3] ss:$0 sm:$0xff] }
  0x12   :  { %v83_v55 = vld [vmem:[#allocation2 + $0x58] sm:$0xff] }
  0x13   :  { %605 = vmatpush3.bf16.msra.mxu0 %v652_v13  ;;  %640 = vmatpush3.bf16.msra.mxu1 %v652_v13  ;;  %v86_v9 = vld [vmem:[#allocation2 + $0x70] sm:$0xff]  ;;  %v84_v13 = vld [vmem:[#allocation2 + $0x60] sm:$0xff] }
  0x14   :  { %606 = vmatprep.subr.bf16.mxu0 %v653_v16  ;;  %633 = vmatprep.subr.bf16.mxu1 %v653_v16  ;;  %v87_v17 = vld [vmem:[#allocation2 + $0x78] sm:$0xff] }
  0x15   :  { %348 = vperm.xlu1 %647, %v278_v20   ;;  %343 = vperm.xlu0 %646, %v277_v21  }
  0x17   :  { %607 = vmatpush3.bf16.msra.mxu0 %v653_v16  ;;  %641 = vmatpush3.bf16.msra.mxu1 %v653_v16  ;;  %v79_v16 = vld [vmem:[#allocation2 + $0x38] sm:$0xff] }
  0x18   :  { %608 = vmatprep.subr.bf16.mxu0 %v654_v19  ;;  %634 = vmatprep.subr.bf16.mxu1 %v654_v19 }
  0x19   :  { %358 = vperm.xlu1 %647, %v280_v23   ;;  %353 = vperm.xlu0 %646, %v279_v24   ;;  %v77_v23 = vld [vmem:[#allocation2 + $0x28] sm:$0xff] }
  0x1a   :  { %v85_v24 = vld [vmem:[#allocation2 + $0x68] sm:$0xff] }
  0x1b   :  { %609 = vmatpush3.bf16.msra.mxu0 %v654_v19  ;;  %642 = vmatpush3.bf16.msra.mxu1 %v654_v19 }
  0x1c   :  { %610 = vmatprep.subr.bf16.mxu0 %v655_v22  ;;  %635 = vmatprep.subr.bf16.mxu1 %v655_v22 }
  0x1d   :  { %368 = vperm.xlu1 %647, %v282_v31   ;;  %363 = vperm.xlu0 %646, %v281_v32  }
  0x1f   :  { %611 = vmatpush3.bf16.msra.mxu0 %v655_v22  ;;  %643 = vmatpush3.bf16.msra.mxu1 %v655_v22 }
  0x21   :  { %378 = vperm.xlu1 %647, %v284_v33   ;;  %373 = vperm.xlu0 %646, %v283_v34  }
  0x22   :  { %613 = vmatmul.mubr.bf16.vlgmr.msra.gmra.mrb[0].mxu0 %v44_v27  ;;  %621 = vmatmul.mubr.bf16.vlgmr.msra.gmra.mrb[0].mxu1 %v48_v28 }
  0x23   :  { %616 = vmatprep.mubr.bf16.mxu0 %v45_v29  ;;  %624 = vmatprep.mubr.bf16.mxu1 %v49_v30 }
  0x2a   :  { %617 = vmatmul.mubr.bf16.gmra.mrb[4].mxu0 %v46_v35  ;;  %625 = vmatmul.mubr.bf16.gmra.mrb[4].mxu1 %v50_v36 }
  0x84   :  { %v791_v38 = vpop.permute.xlu1 %313  ;;  %v793_v39 = vpop.permute.xlu0 %303 }
  0x88   :  { %v795_v40 = vpop.permute.xlu1 %318  ;;  %v797_v41 = vpop.permute.xlu0 %308 }
  0x8c   :  { %v799_v42 = vpop.permute.xlu1 %328  ;;  %v801_v43 = vpop.permute.xlu0 %323 }
  0x90   :  { %v803_v44 = vpop.permute.xlu1 %338  ;;  %v805_v45 = vpop.permute.xlu0 %333 }
  0x94   :  { %v807_v48 = vpop.permute.xlu1 %348  ;;  %v809_v49 = vpop.permute.xlu0 %343 }
  0x98   :  { %v819_v10 = vpop.permute.xlu1 %358  ;;  %v821_v11 = vpop.permute.xlu0 %353 }
  0xf5   :  { %v614_v52 = vpop.f32.mrb[0].mxu0  ;;  %v622_v53 = vpop.f32.mrb[0].mxu1 }
  0xf6   :  { %v235_v56 = vadd.f32 %v614_v52, %v74_v46  ;;  %v243_v57 = vadd.f32 %v622_v53, %v82_v47  ;;  %v170_v58 = vpop.f32.mrb[1].mxu0  ;;  %v202_v59 = vpop.f32.mrb[1].mxu1 }
  0xf7   :  { %v233_v62 = vadd.f32 %v170_v58, %v72_v50  ;;  %v241_v63 = vadd.f32 %v202_v59, %v80_v51  ;;  %v615_v0 = vpop.f32.mrb[2].mxu0  ;;  %v623_v1 = vpop.f32.mrb[2].mxu1 }
  0xf8   :  { %252 = vst.msk [vmem:[#allocation2 + $0x10] sm:$0xff] %vm22_vm0, %v235_v56  ;;  %260 = vst.msk [vmem:[#allocation2 + $0x50] sm:$0xff] %vm22_vm0, %v243_v57  ;;  %v236_v2 = vadd.f32 %v615_v0, %v75_v54  ;;  %v244_v3 = vadd.f32 %v623_v1, %v83_v55  ;;  %v173_v4 = vpop.f32.mrb[3].mxu0  ;;  %v205_v5 = vpop.f32.mrb[3].mxu1 }
  0xf9   :  { %250 = vst.msk [vmem:[#allocation2] sm:$0xff] %vm22_vm0, %v233_v62  ;;  %258 = vst.msk [vmem:[#allocation2 + $0x40] sm:$0xff] %vm22_vm0, %v241_v63  ;;  %v234_v6 = vadd.f32 %v173_v4, %v73_v60  ;;  %v242_v7 = vadd.f32 %v205_v5, %v81_v61  ;;  %v842_v61 = vpop.permute.xlu0 %363 }
  0xfa   :  { %253 = vst.msk [vmem:[#allocation2 + $0x18] sm:$0xff] %vm22_vm0, %v236_v2  ;;  %261 = vst.msk [vmem:[#allocation2 + $0x58] sm:$0xff] %vm22_vm0, %v244_v3 }
  0xfb   :  { %251 = vst.msk [vmem:[#allocation2 + $0x8] sm:$0xff] %vm22_vm0, %v234_v6  ;;  %259 = vst.msk [vmem:[#allocation2 + $0x48] sm:$0xff] %vm22_vm0, %v242_v7  ;;  %v852_v6 = vpop.permute.xlu1 %368 }
  0xfd   :  { %v618_v14 = vpop.f32.mrb[4].mxu0  ;;  %v626_v15 = vpop.f32.mrb[4].mxu1 }
  0xfe   :  { %v239_v19 = vadd.f32 %v618_v14, %v78_v8  ;;  %v247_v20 = vadd.f32 %v626_v15, %v86_v9  ;;  %v186_v21 = vpop.f32.mrb[5].mxu0  ;;  %v218_v22 = vpop.f32.mrb[5].mxu1 }
  0xff   :  { %v287_v25 = vld [vmem:[#allocation2 + $0x10] sm:$0xff]  ;;  %v237_v27 = vadd.f32 %v186_v21, %v76_v12  ;;  %v245_v28 = vadd.f32 %v218_v22, %v84_v13  ;;  %v619_v29 = vpop.f32.mrb[6].mxu0  ;;  %v627_v30 = vpop.f32.mrb[6].mxu1 }
 0x100   :  { %v295_v26 = vld [vmem:[#allocation2 + $0x50] sm:$0xff]  ;;  %v383_v31 = vmul.f32 %v791_v38, %v287_v25  ;;  %v285_v33 = vld [vmem:[#allocation2] sm:$0xff]  ;;  %256 = vst.msk [vmem:[#allocation2 + $0x30] sm:$0xff] %vm22_vm0, %v239_v19  ;;  %264 = vst.msk [vmem:[#allocation2 + $0x70] sm:$0xff] %vm22_vm0, %v247_v20  ;;  %v240_v35 = vadd.f32 %v619_v29, %v79_v16  ;;  %v248_v36 = vadd.f32 %v627_v30, %v87_v17  ;;  %v189_v37 = vpop.f32.mrb[7].mxu0  ;;  %v221_v46 = vpop.f32.mrb[7].mxu1 }
 0x101   :  { %v391_v32 = vmul.f32 %v821_v11, %v295_v26  ;;  %v293_v34 = vld [vmem:[#allocation2 + $0x40] sm:$0xff]  ;;  %v381_v47 = vmul.f32 %v793_v39, %v285_v33  ;;  %v288_v51 = vld [vmem:[#allocation2 + $0x18] sm:$0xff]  ;;  %254 = vst.msk [vmem:[#allocation2 + $0x20] sm:$0xff] %vm22_vm0, %v237_v27  ;;  %262 = vst.msk [vmem:[#allocation2 + $0x60] sm:$0xff] %vm22_vm0, %v245_v28  ;;  %v238_v53 = vadd.f32 %v189_v37, %v77_v23  ;;  %v374_v29 = vpop.permute.xlu0 %373 }
 0x102   :  { %v389_v50 = vmul.f32 %v809_v49, %v293_v34  ;;  %v296_v52 = vld [vmem:[#allocation2 + $0x58] sm:$0xff]  ;;  %v246_v54 = vadd.f32 %v221_v46, %v85_v24  ;;  %v406_v55 = vadd.f32 %v826_v18, %v383_v31  ;;  %v384_v57 = vmul.f32 %v795_v40, %v288_v51  ;;  %v286_v59 = vld [vmem:[#allocation2 + $0x8] sm:$0xff]  ;;  %257 = vst.msk [vmem:[#allocation2 + $0x38] sm:$0xff] %vm22_vm0, %v240_v35 }
 0x103   :  { %v414_v56 = vadd.f32 %v826_v18, %v391_v32  ;;  %v392_v58 = vmul.f32 %v819_v10, %v296_v52  ;;  %v294_v60 = vld [vmem:[#allocation2 + $0x48] sm:$0xff]  ;;  %265 = vst.msk [vmem:[#allocation2 + $0x78] sm:$0xff] %vm22_vm0, %v248_v36  ;;  %v404_v62 = vadd.f32 %v826_v18, %v381_v47  ;;  %v382_v0 = vmul.f32 %v797_v41, %v286_v59 }
 0x104   :  { %v412_v63 = vadd.f32 %v826_v18, %v389_v50  ;;  %v390_v1 = vmul.f32 %v807_v48, %v294_v60  ;;  %255 = vst.msk [vmem:[#allocation2 + $0x28] sm:$0xff] %vm22_vm0, %v238_v53  ;;  %263 = vst.msk [vmem:[#allocation2 + $0x68] sm:$0xff] %vm22_vm0, %v246_v54  ;;  %v422_v2 = vmax.f32 %v406_v55, 0.0  ;;  %v407_v4 = vadd.f32 %v826_v18, %v384_v57 }
 0x105   :  { %v430_v3 = vmax.f32 %v414_v56, 0.0  ;;  %v415_v5 = vadd.f32 %v826_v18, %v392_v58  ;;  %v420_v7 = vmax.f32 %v404_v62, 0.0  ;;  %v405_v9 = vadd.f32 %v826_v18, %v382_v0 }
 0x106   :  { %v428_v8 = vmax.f32 %v412_v63, 0.0  ;;  %v413_v12 = vadd.f32 %v826_v18, %v390_v1  ;;  %v438_v13 = vmul.f32 %v422_v2, %v791_v38  ;;  %v423_v15 = vmax.f32 %v407_v4, 0.0 }
 0x107   :  { %v446_v14 = vmul.f32 %v430_v3, %v821_v11  ;;  %v431_v16 = vmax.f32 %v415_v5, 0.0  ;;  %v436_v17 = vmul.f32 %v420_v7, %v793_v39  ;;  %v421_v20 = vmax.f32 %v405_v9, 0.0  ;;  %v291_v22 = vld [vmem:[#allocation2 + $0x30] sm:$0xff] }
 0x108   :  { %v444_v19 = vmul.f32 %v428_v8, %v809_v49  ;;  %v429_v21 = vmax.f32 %v413_v12, 0.0  ;;  %v299_v23 = vld [vmem:[#allocation2 + $0x70] sm:$0xff]  ;;  %v566_v24 = vpack.c.bf16 %v438_v13, %v438_v13  ;;  %v439_v26 = vmul.f32 %v423_v15, %v795_v40  ;;  %v289_v28 = vld [vmem:[#allocation2 + $0x20] sm:$0xff] }
 0x109   :  { %v574_v25 = vpack.c.bf16 %v446_v14, %v446_v14  ;;  %v447_v27 = vmul.f32 %v431_v16, %v819_v10  ;;  %v297_v38 = vld [vmem:[#allocation2 + $0x60] sm:$0xff]  ;;  %v564_v11 = vpack.c.bf16 %v436_v17, %v436_v17  ;;  %v437_v31 = vmul.f32 %v421_v20, %v797_v41  ;;  %v292_v49 = vld [vmem:[#allocation2 + $0x38] sm:$0xff] }
 0x10a   :  { %v572_v30 = vpack.c.bf16 %v444_v19, %v444_v19  ;;  %v445_v39 = vmul.f32 %v429_v21, %v807_v48  ;;  %v300_v32 = vld [vmem:[#allocation2 + $0x78] sm:$0xff]  ;;  %519 = vst.msk [vmem:[%s952_s4 + $0x8] sm:$0xf] %vm516_vm1, %v566_v24  ;;  %v567_v40 = vpack.c.bf16 %v439_v26, %v439_v26  ;;  %v387_v33 = vmul.f32 %v805_v45, %v291_v22  ;;  %v379_v48 = vpop.permute.xlu1 %378 }
 0x10b   :  { %527 = vst.msk [vmem:[%s952_s4 + $0x28] sm:$0xf] %vm516_vm1, %v574_v25  ;;  %v575_v10 = vpack.c.bf16 %v447_v27, %v447_v27  ;;  %v395_v34 = vmul.f32 %v374_v29, %v299_v23  ;;  %v290_v41 = vld [vmem:[#allocation2 + $0x28] sm:$0xff]  ;;  %517 = vst.msk [vmem:[%s952_s4] sm:$0xf] %vm516_vm1, %v564_v11  ;;  %v565_v36 = vpack.c.bf16 %v437_v31, %v437_v31 }
 0x10c   :  { %v298_v35 = vld [vmem:[#allocation2 + $0x68] sm:$0xff]  ;;  %525 = vst.msk [vmem:[%s952_s4 + $0x20] sm:$0xf] %vm516_vm1, %v572_v30  ;;  %v573_v37 = vpack.c.bf16 %v445_v39, %v445_v39  ;;  %v385_v46 = vmul.f32 %v801_v43, %v289_v28  ;;  %v393_v47 = vmul.f32 %v842_v61, %v297_v38  ;;  %520 = vst.msk [vmem:[%s952_s4 + $0xc] sm:$0xf] %vm516_vm1, %v567_v40 }
 0x10d   :  { %528 = vst.msk [vmem:[%s952_s4 + $0x2c] sm:$0xf] %vm516_vm1, %v575_v10  ;;  %v410_v50 = vadd.f32 %v826_v18, %v387_v33  ;;  %v418_v51 = vadd.f32 %v826_v18, %v395_v34  ;;  %v388_v52 = vmul.f32 %v803_v44, %v292_v49  ;;  %v396_v53 = vmul.f32 %v379_v48, %v300_v32 }
 0x10e   :  { %518 = vst.msk [vmem:[%s952_s4 + $0x4] sm:$0xf] %vm516_vm1, %v565_v36  ;;  %526 = vst.msk [vmem:[%s952_s4 + $0x24] sm:$0xf] %vm516_vm1, %v573_v37  ;;  %v408_v54 = vadd.f32 %v826_v18, %v385_v46  ;;  %v416_v55 = vadd.f32 %v826_v18, %v393_v47  ;;  %v386_v56 = vmul.f32 %v799_v42, %v290_v41 }
 0x10f   :  { %v394_v57 = vmul.f32 %v852_v6, %v298_v35  ;;  %v426_v58 = vmax.f32 %v410_v50, 0.0  ;;  %v434_v59 = vmax.f32 %v418_v51, 0.0  ;;  %v411_v60 = vadd.f32 %v826_v18, %v388_v52 }
 0x110   :  { %v419_v62 = vadd.f32 %v826_v18, %v396_v53  ;;  %v424_v63 = vmax.f32 %v408_v54, 0.0  ;;  %v432_v0 = vmax.f32 %v416_v55, 0.0  ;;  %v409_v1 = vadd.f32 %v826_v18, %v386_v56 }
 0x111   :  { %v417_v2 = vadd.f32 %v826_v18, %v394_v57  ;;  %v442_v3 = vmul.f32 %v426_v58, %v805_v45  ;;  %v450_v4 = vmul.f32 %v434_v59, %v374_v29  ;;  %v427_v5 = vmax.f32 %v411_v60, 0.0 }
 0x112   :  { %v435_v7 = vmax.f32 %v419_v62, 0.0  ;;  %v440_v8 = vmul.f32 %v424_v63, %v801_v43  ;;  %v448_v9 = vmul.f32 %v432_v0, %v842_v61  ;;  %v425_v12 = vmax.f32 %v409_v1, 0.0 }
 0x113   :  { %v433_v13 = vmax.f32 %v417_v2, 0.0  ;;  %v570_v14 = vpack.c.bf16 %v442_v3, %v442_v3  ;;  %v578_v15 = vpack.c.bf16 %v450_v4, %v450_v4  ;;  %v443_v16 = vmul.f32 %v427_v5, %v803_v44 }
 0x114   :  { %v451_v17 = vmul.f32 %v435_v7, %v379_v48  ;;  %v568_v19 = vpack.c.bf16 %v440_v8, %v440_v8  ;;  %v576_v20 = vpack.c.bf16 %v448_v9, %v448_v9  ;;  %v441_v18 = vmul.f32 %v425_v12, %v799_v42 }
 0x115   :  { %v449_v45 = vmul.f32 %v433_v13, %v852_v6  ;;  %523 = vst.msk [vmem:[%s952_s4 + $0x18] sm:$0xf] %vm516_vm1, %v570_v14  ;;  %531 = vst.msk [vmem:[%s952_s4 + $0x38] sm:$0xf] %vm516_vm1, %v578_v15  ;;  %v571_v43 = vpack.c.bf16 %v443_v16, %v443_v16 }
 0x116   :  { %v579_v61 = vpack.c.bf16 %v451_v17, %v451_v17  ;;  %521 = vst.msk [vmem:[%s952_s4 + $0x10] sm:$0xf] %vm516_vm1, %v568_v19  ;;  %529 = vst.msk [vmem:[%s952_s4 + $0x30] sm:$0xf] %vm516_vm1, %v576_v20  ;;  %v569_v42 = vpack.c.bf16 %v441_v18, %v441_v18 }
 0x117   :  { %v577_v44 = vpack.c.bf16 %v449_v45, %v449_v45  ;;  %524 = vst.msk [vmem:[%s952_s4 + $0x1c] sm:$0xf] %vm516_vm1, %v571_v43 }
 0x118   :  { %532 = vst.msk [vmem:[%s952_s4 + $0x3c] sm:$0xf] %vm516_vm1, %v579_v61  ;;  %522 = vst.msk [vmem:[%s952_s4 + $0x14] sm:$0xf] %vm516_vm1, %v569_v42 }
 0x119   :  { %530 = vst.msk [vmem:[%s952_s4 + $0x34] sm:$0xf] %vm516_vm1, %v577_v44 }

</bundles_post_ra>
